<compile_context>
chip_gen: v7x
topology: tpu7x:2x2x1
jax: 0.10.0
libtpu: 0.0.40
codegen_flags: <defaults>
</compile_context>

<pallas_src>
import jax
import jax.numpy as jnp
from jax.experimental import pallas as pl
from jax.experimental.pallas import tpu as pltpu

_LANE = 128    # last-dim tile granularity
_SUBLANE = 8   # second-to-last granularity (f32)
_MIB = 1024 * 1024


def _round_up(x, m):
    return ((x + m - 1) // m) * m


def _resolve_activation(name):
    """Robust activation lookup (jax.nn first, then jnp, e.g. 'tanh')."""
    fn = getattr(jax.nn, name, None)
    if fn is None:
        fn = getattr(jnp, name, None)
    if fn is None:
        raise ValueError(f"unsupported activation: {name!r}")
    return fn


def _vmem_capacity_bytes():
    """Physical per-core VMEM (generation aware); conservative default."""
    try:
        cap = int(pltpu.get_tpu_info().vmem_capacity_bytes)
        if cap > 0:
            return cap
    except Exception:
        pass
    return 64 * _MIB   # conservative (v7x per-TensorCore)


def _largest_divisor_tile(dim, cap, step):
    """Largest multiple of `step` that divides `dim` and is <= cap."""
    t = min(cap, dim)
    t -= t % step
    t = max(t, step)
    while dim % t:
        t -= step
    return t


# --------------------------------------------------------------------------
# Kernel bodies
# --------------------------------------------------------------------------
def _fused_resident_kernel(num_layers, act_fn):
    """Whole MLP for one batch tile; all weights already resident in VMEM."""

    def kernel(x_ref, *refs):
        params = refs[:2 * num_layers]      # w0, b0, w1, b1, ...
        o_ref = refs[2 * num_layers]
        h = x_ref[...]
        for i in range(num_layers):
            w_ref = params[2 * i]
            b_ref = params[2 * i + 1]
            h = jnp.dot(h.astype(w_ref.dtype), w_ref[...],
                        preferred_element_type=jnp.float32)
            h = h + b_ref[...].astype(jnp.float32)
            if i < num_layers - 1:
                # Activation in f32, then cast to the next layer's weight dtype
                # to shrink the live intermediate (matters in v7x's 64 MiB).
                h = act_fn(h).astype(params[2 * (i + 1)].dtype)
        o_ref[...] = h.astype(o_ref.dtype)

    return kernel


def _fused_prefetch_kernel(num_layers, act_fn):
    """Single-tile MLP; weights live in HBM and are DMA-prefetched so that
    layer-(i+1) weight movement overlaps layer-i compute."""

    def kernel(*refs):
        x_ref = refs[0]
        w_hbm = [refs[1 + 2 * i] for i in range(num_layers)]
        b_hbm = [refs[2 + 2 * i] for i in range(num_layers)]
        o_ref = refs[1 + 2 * num_layers]
        scratch = refs[2 + 2 * num_layers:]
        w_v = [scratch[2 * i] for i in range(num_layers)]
        b_v = [scratch[2 * i + 1] for i in range(num_layers)]
        sem = scratch[2 * num_layers]

        # Kick off every weight/bias HBM->VMEM DMA up front; wait on each
        # layer's copy only right before its matmul.
        copies = []
        for i in range(num_layers):
            cw = pltpu.make_async_copy(w_hbm[i], w_v[i], sem.at[2 * i])
            cb = pltpu.make_async_copy(b_hbm[i], b_v[i], sem.at[2 * i + 1])
            cw.start()
            cb.start()
            copies.append((cw, cb))

        h = x_ref[...]
        for i in range(num_layers):
            cw, cb = copies[i]
            cw.wait()
            cb.wait()
            h = jnp.dot(h.astype(w_v[i].dtype), w_v[i][...],
                        preferred_element_type=jnp.float32)
            h = h + b_v[i][...].astype(jnp.float32)
            if i < num_layers - 1:
                h = act_fn(h).astype(w_v[i + 1].dtype)
        o_ref[...] = h.astype(o_ref.dtype)

    return kernel


def _linear_kernel(act_fn, apply_act):
    """One Linear (+ optional activation) as an (M,N,K)-tiled matmul."""

    def kernel(x_ref, w_ref, b_ref, o_ref, acc_ref):
        @pl.when(pl.program_id(2) == 0)
        def _init():
            acc_ref[...] = jnp.zeros_like(acc_ref)

        acc_ref[...] += jnp.dot(x_ref[...].astype(w_ref.dtype), w_ref[...],
                                preferred_element_type=jnp.float32)

        @pl.when(pl.program_id(2) == pl.num_programs(2) - 1)
        def _finalize():
            r = acc_ref[...] + b_ref[...].astype(jnp.float32)
            if apply_act:
                r = act_fn(r)
            o_ref[...] = r.astype(o_ref.dtype)

    return kernel


# --------------------------------------------------------------------------
# Weight-streaming (per-layer) path
# --------------------------------------------------------------------------
def _linear_streamed(x, w, b, act_fn, apply_act, out_dtype, tm):
    M, K = x.shape
    N = w.shape[1]
    tn = _largest_divisor_tile(N, 512, _LANE)
    tk = _largest_divisor_tile(K, 512, _LANE)
    grid = (M // tm, N // tn, K // tk)

    flops = 2 * M * N * K
    bytes_accessed = int(M * K * x.dtype.itemsize
                         + (M // tm) * (K * N + N) * w.dtype.itemsize
                         + M * N * jnp.dtype(out_dtype).itemsize)

    return pl.pallas_call(
        _linear_kernel(act_fn, apply_act),
        out_shape=jax.ShapeDtypeStruct((M, N), out_dtype),
        grid=grid,
        in_specs=[
            pl.BlockSpec((tm, tk), lambda i, j, k: (i, k)),
            # Streamed weight tiles: BlockSpec's default double-buffering
            # overlaps the HBM weight DMA with the MXU.
            pl.BlockSpec((tk, tn), lambda i, j, k: (k, j)),
            pl.BlockSpec((1, tn), lambda i, j, k: (0, j)),
        ],
        out_specs=pl.BlockSpec((tm, tn), lambda i, j, k: (i, j)),
        scratch_shapes=[pltpu.VMEM((tm, tn), jnp.float32)],
        compiler_params=pltpu.CompilerParams(
            dimension_semantics=("parallel", "parallel", "arbitrary")),
        cost_estimate=pl.CostEstimate(flops=flops, transcendentals=0,
                                      bytes_accessed=bytes_accessed),
    )(x, w, b)


def _mlp_forward_streamed(x, w_p, b_p, act_fn, padded, B, in_dim, out_dim):
    num_layers = len(w_p)
    M_pad = _round_up(B, _SUBLANE)
    tm = _largest_divisor_tile(M_pad, 512, _SUBLANE)
    if tm < 128 and B > 256:          # avoid pathologically thin batch tiles
        tm = 256
        M_pad = _round_up(B, tm)

    h = x
    if h.shape != (M_pad, padded[0]):
        h = jnp.pad(h, ((0, M_pad - B), (0, padded[0] - in_dim)))
    for i in range(num_layers):
        apply_act = i < num_layers - 1
        out_dtype = w_p[i].dtype if apply_act else x.dtype
        h = _linear_streamed(h, w_p[i], b_p[i], act_fn, apply_act, out_dtype, tm)
    if M_pad != B or padded[-1] != out_dim:
        h = h[:B, :out_dim]
    return h


# --------------------------------------------------------------------------
# Parameter padding
# --------------------------------------------------------------------------
def _pad_params(weights, biases, padded_sizes, weight_dtype=None):
    """Zero-pad params to lane multiples; skips pads when already aligned.

    NOTE: for repeated inference, cache the result of this function (or jit
    the whole forward) so padding is not redone every call."""
    w_p, b_p = [], []
    for i, (w, b) in enumerate(zip(weights, biases)):
        pin, pout = padded_sizes[i], padded_sizes[i + 1]
        if weight_dtype is not None:
            w = w.astype(weight_dtype)     # e.g. bf16: halves HBM/VMEM traffic
        if w.shape != (pin, pout):
            w = jnp.pad(w, ((0, pin - w.shape[0]), (0, pout - w.shape[1])))
        b2 = b.reshape(1, -1)
        if b2.shape[1] != pout:
            b2 = jnp.pad(b2, ((0, 0), (0, pout - b2.shape[1])))
        w_p.append(w)
        b_p.append(b2)
    return w_p, b_p


# --------------------------------------------------------------------------
# Public forward
# --------------------------------------------------------------------------
def mlp_forward(x, weights, biases, *, activation="relu", batch_tile=None,
                weight_dtype=None, max_resident_param_fraction=0.4):
    """Fused MLP forward pass.

    x:       (B, input_size)
    weights: list of (in_i, out_i) arrays (PyTorch W transposed)
    biases:  list of (out_i,) arrays
    """
    num_layers = len(weights)
    assert len(biases) == num_layers
    act_fn = _resolve_activation(activation)

    B, in_dim = x.shape
    out_dim = weights[-1].shape[1]

    sizes = [in_dim] + [w.shape[1] for w in weights]
    padded = [_round_up(s, _LANE) for s in sizes]
    w_p, b_p = _pad_params(weights, biases, padded, weight_dtype)

    itemsize = x.dtype.itemsize
    param_bytes = sum(int(t.size) * t.dtype.itemsize for t in w_p + b_p)

    vmem_cap = _vmem_capacity_bytes()
    vmem_budget = vmem_cap * 7 // 8            # ~87.5% of physical VMEM

    # ---- path selection -----------------------------------------------------
    use_streaming = param_bytes > max_resident_param_fraction * vmem_cap

    if not use_streaming:
        # Batch-tile heuristic (generation aware):
        #  * single tile only for tiny batches (no per-step overhead),
        #  * >=2 grid steps once B > 128 (keeps both v7x TensorCores busy),
        #  * 256-row tiles on ~64 MiB chips (v7x), 512-row on 128 MiB chips.
        if batch_tile is None:
            large_tile = 256 if vmem_cap <= 80 * _MIB else 512
            if B <= 128:
                batch_tile = _round_up(B, _SUBLANE)
            elif B <= 2 * large_tile:
                batch_tile = _round_up(-(-B // 2), _SUBLANE)
            else:
                batch_tile = large_tile

        live_pair = max(padded[i] + padded[i + 1] for i in range(num_layers))

        def _footprint(bt, steps):
            nbuf = 1 if steps == 1 else 2           # x/out buffering depth
            io_bytes = nbuf * bt * (padded[0] + padded[-1]) * itemsize
            interm = bt * live_pair * 4             # two live f32 tensors/layer
            return param_bytes + io_bytes + interm + 4 * _MIB  # scratch headroom

        while True:
            B_pad = _round_up(B, batch_tile)
            steps = B_pad // batch_tile
            fp = _footprint(batch_tile, steps)
            if fp <= vmem_budget or batch_tile <= _SUBLANE:
                break
            batch_tile = max(_SUBLANE, _round_up(batch_tile // 2, _SUBLANE))
        if fp > vmem_budget:
            use_streaming = True      # params + tile cannot stay resident

    if use_streaming:
        return _mlp_forward_streamed(x, w_p, b_p, act_fn, padded,
                                     B, in_dim, out_dim)

    # ---- fused paths ----------------------------------------------------------
    need_x_pad = (B_pad != B) or (padded[0] != in_dim)
    x_p = jnp.pad(x, ((0, B_pad - B), (0, padded[0] - in_dim))) if need_x_pad else x

    vmem_limit = min(max(fp * 5 // 4, 32 * _MIB), vmem_budget)

    flops = 2 * B_pad * sum(padded[i] * padded[i + 1] for i in range(num_layers))
    bytes_accessed = int(x_p.size) * itemsize + param_bytes \
        + B_pad * padded[-1] * itemsize
    cost = pl.CostEstimate(flops=flops, transcendentals=0,
                           bytes_accessed=int(bytes_accessed))

    args = [x_p]
    for w, b in zip(w_p, b_p):
        args += [w, b]

    if steps == 1:
        # Single grid step: no grid, x/out single-buffered whole arrays,
        # weights in HBM (pl.ANY) with manual DMA prefetch overlapping compute.
        # TODO(synk): explicit core_map split so this latency path can also use
        # both v7x TensorCores instead of one.
        vmem_whole = pl.BlockSpec(memory_space=pltpu.MemorySpace.VMEM)
        hbm = pl.BlockSpec(memory_space=pl.ANY)
        scratch = []
        for w, b in zip(w_p, b_p):
            scratch.append(pltpu.VMEM(w.shape, w.dtype))
            scratch.append(pltpu.VMEM(b.shape, b.dtype))
        scratch.append(pltpu.SemaphoreType.DMA((2 * num_layers,)))
        out_padded = pl.pallas_call(
            _fused_prefetch_kernel(num_layers, act_fn),
            out_shape=jax.ShapeDtypeStruct((B_pad, padded[-1]), x.dtype),
            in_specs=[vmem_whole] + [hbm] * (2 * num_layers),
            out_specs=vmem_whole,
            scratch_shapes=scratch,
            compiler_params=pltpu.CompilerParams(vmem_limit_bytes=vmem_limit),
            cost_estimate=cost,
        )(*args)
    else:
        x_spec = pl.BlockSpec((batch_tile, padded[0]), lambda i: (i, 0))
        out_spec = pl.BlockSpec((batch_tile, padded[-1]), lambda i: (i, 0))
        vmem_whole = pl.BlockSpec(memory_space=pltpu.MemorySpace.VMEM)
        in_specs = [x_spec] + [vmem_whole] * (2 * num_layers)
        out_padded = pl.pallas_call(
            _fused_resident_kernel(num_layers, act_fn),
            out_shape=jax.ShapeDtypeStruct((B_pad, padded[-1]), x.dtype),
            grid=(steps,),
            in_specs=in_specs,
            out_specs=out_spec,
            compiler_params=pltpu.CompilerParams(
                dimension_semantics=("parallel",),
                vmem_limit_bytes=vmem_limit),
            cost_estimate=cost,
        )(*args)

    if B_pad != B or padded[-1] != out_dim:
        out_padded = out_padded[:B, :out_dim]
    return out_padded


# --------------------------------------------------------------------------
# Reference / init helpers
# --------------------------------------------------------------------------
def init_mlp_params(key, input_size, output_size, hidden_sizes):
    """PyTorch-style Linear init: U(-1/sqrt(fan_in), 1/sqrt(fan_in))."""
    sizes = [input_size] + list(hidden_sizes) + [output_size]
    weights, biases = [], []
    for i in range(len(sizes) - 1):
        fan_in, fan_out = sizes[i], sizes[i + 1]
        key, kw, kb = jax.random.split(key, 3)
        bound = 1.0 / jnp.sqrt(jnp.float32(fan_in))
        w = jax.random.uniform(kw, (fan_in, fan_out), jnp.float32, -bound, bound)
        b = jax.random.uniform(kb, (fan_out,), jnp.float32, -bound, bound)
        weights.append(w)   # stored as (in, out) == PyTorch W.T
        biases.append(b)
    return weights, biases


def mlp_reference(x, weights, biases, activation="relu"):
    act_fn = _resolve_activation(activation)
    h = x
    for i, (w, b) in enumerate(zip(weights, biases)):
        h = h @ w + b
        if i < len(weights) - 1:
            h = act_fn(h)
    return h


if __name__ == "__main__":
    # MLP(input_size=32, output_size=16, hidden_sizes=[64, 32], activation="relu")
    key = jax.random.PRNGKey(0)
    key, kx = jax.random.split(key)

    batch, input_size, output_size = 16, 32, 16
    hidden_sizes = [64, 32]
    activation = "relu"

    x = jax.random.normal(kx, (batch, input_size), jnp.float32)
    weights, biases = init_mlp_params(key, input_size, output_size, hidden_sizes)
    ref = mlp_reference(x, weights, biases, activation=activation)

    # 1) Small batch -> single-tile fused path with manual weight-DMA overlap.
    out = jax.block_until_ready(mlp_forward(x, weights, biases,
                                            activation=activation))
    assert out.shape == (batch, output_size)
    assert jnp.allclose(out, ref, atol=1e-5, rtol=1e-5), "small-batch mismatch"

    # 2) Larger batch -> multi-step "parallel" grid with resident weights.
    xb = jax.random.normal(kx, (384, input_size), jnp.float32)
    refb = mlp_reference(xb, weights, biases, activation=activation)
    outb = jax.block_until_ready(mlp_forward(xb, weights, biases,
                                             activation=activation))
    assert outb.shape == (384, output_size)
    assert jnp.allclose(outb, refb, atol=1e-5, rtol=1e-5), "large-batch mismatch"

    # 3) Force the weight-streaming fallback (per-layer K/N-tiled matmuls).
    outs = jax.block_until_ready(
        mlp_forward(x, weights, biases, activation=activation,
                    max_resident_param_fraction=0.0))
    assert jnp.allclose(outs, ref, atol=1e-5, rtol=1e-5), "streamed mismatch"

    print("KERNEL_OK")
</pallas_src>

<mosaic_0001>
module attributes {stable_mosaic.version = 11 : i64} {
  func.func @kernel(%arg0: memref<16x128xf32, #tpu.memory_space<vmem>>, %arg1: memref<128x128xf32, #tpu.memory_space<any>>, %arg2: memref<1x128xf32, #tpu.memory_space<any>>, %arg3: memref<128x128xf32, #tpu.memory_space<any>>, %arg4: memref<1x128xf32, #tpu.memory_space<any>>, %arg5: memref<128x128xf32, #tpu.memory_space<any>>, %arg6: memref<1x128xf32, #tpu.memory_space<any>>, %arg7: memref<16x128xf32, #tpu.memory_space<vmem>>, %arg8: memref<128x128xf32, #tpu.memory_space<vmem>>, %arg9: memref<1x128xf32, #tpu.memory_space<vmem>>, %arg10: memref<128x128xf32, #tpu.memory_space<vmem>>, %arg11: memref<1x128xf32, #tpu.memory_space<vmem>>, %arg12: memref<128x128xf32, #tpu.memory_space<vmem>>, %arg13: memref<1x128xf32, #tpu.memory_space<vmem>>, %arg14: memref<6x!tpu.dma_semaphore, #tpu.memory_space<semaphore_mem>>) attributes {dimension_semantics = [], scalar_prefetch = 0 : i64, scratch_operands = 7 : i64, tpu.core_type = #tpu.core_type<tc>} {
    %c0_i32 = arith.constant 0 : i32
    %0 = tpu.memref_slice %arg14[%c0_i32] : memref<6x!tpu.dma_semaphore, #tpu.memory_space<semaphore_mem>> -> memref<1x!tpu.dma_semaphore, #tpu.memory_space<semaphore_mem>>
    %1 = tpu.memref_squeeze %0 : memref<1x!tpu.dma_semaphore, #tpu.memory_space<semaphore_mem>> -> memref<!tpu.dma_semaphore, #tpu.memory_space<semaphore_mem>>
    tpu.enqueue_dma source(%arg1 : memref<128x128xf32, #tpu.memory_space<any>>) target(%arg8 : memref<128x128xf32, #tpu.memory_space<vmem>>) target_semaphore(%1 : memref<!tpu.dma_semaphore, #tpu.memory_space<semaphore_mem>>)
    %c1_i32 = arith.constant 1 : i32
    %2 = tpu.memref_slice %arg14[%c1_i32] : memref<6x!tpu.dma_semaphore, #tpu.memory_space<semaphore_mem>> -> memref<1x!tpu.dma_semaphore, #tpu.memory_space<semaphore_mem>>
    %3 = tpu.memref_squeeze %2 : memref<1x!tpu.dma_semaphore, #tpu.memory_space<semaphore_mem>> -> memref<!tpu.dma_semaphore, #tpu.memory_space<semaphore_mem>>
    tpu.enqueue_dma source(%arg2 : memref<1x128xf32, #tpu.memory_space<any>>) target(%arg9 : memref<1x128xf32, #tpu.memory_space<vmem>>) target_semaphore(%3 : memref<!tpu.dma_semaphore, #tpu.memory_space<semaphore_mem>>)
    %c2_i32 = arith.constant 2 : i32
    %4 = tpu.memref_slice %arg14[%c2_i32] : memref<6x!tpu.dma_semaphore, #tpu.memory_space<semaphore_mem>> -> memref<1x!tpu.dma_semaphore, #tpu.memory_space<semaphore_mem>>
    %5 = tpu.memref_squeeze %4 : memref<1x!tpu.dma_semaphore, #tpu.memory_space<semaphore_mem>> -> memref<!tpu.dma_semaphore, #tpu.memory_space<semaphore_mem>>
    tpu.enqueue_dma source(%arg3 : memref<128x128xf32, #tpu.memory_space<any>>) target(%arg10 : memref<128x128xf32, #tpu.memory_space<vmem>>) target_semaphore(%5 : memref<!tpu.dma_semaphore, #tpu.memory_space<semaphore_mem>>)
    %c3_i32 = arith.constant 3 : i32
    %6 = tpu.memref_slice %arg14[%c3_i32] : memref<6x!tpu.dma_semaphore, #tpu.memory_space<semaphore_mem>> -> memref<1x!tpu.dma_semaphore, #tpu.memory_space<semaphore_mem>>
    %7 = tpu.memref_squeeze %6 : memref<1x!tpu.dma_semaphore, #tpu.memory_space<semaphore_mem>> -> memref<!tpu.dma_semaphore, #tpu.memory_space<semaphore_mem>>
    tpu.enqueue_dma source(%arg4 : memref<1x128xf32, #tpu.memory_space<any>>) target(%arg11 : memref<1x128xf32, #tpu.memory_space<vmem>>) target_semaphore(%7 : memref<!tpu.dma_semaphore, #tpu.memory_space<semaphore_mem>>)
    %c4_i32 = arith.constant 4 : i32
    %8 = tpu.memref_slice %arg14[%c4_i32] : memref<6x!tpu.dma_semaphore, #tpu.memory_space<semaphore_mem>> -> memref<1x!tpu.dma_semaphore, #tpu.memory_space<semaphore_mem>>
    %9 = tpu.memref_squeeze %8 : memref<1x!tpu.dma_semaphore, #tpu.memory_space<semaphore_mem>> -> memref<!tpu.dma_semaphore, #tpu.memory_space<semaphore_mem>>
    tpu.enqueue_dma source(%arg5 : memref<128x128xf32, #tpu.memory_space<any>>) target(%arg12 : memref<128x128xf32, #tpu.memory_space<vmem>>) target_semaphore(%9 : memref<!tpu.dma_semaphore, #tpu.memory_space<semaphore_mem>>)
    %c5_i32 = arith.constant 5 : i32
    %10 = tpu.memref_slice %arg14[%c5_i32] : memref<6x!tpu.dma_semaphore, #tpu.memory_space<semaphore_mem>> -> memref<1x!tpu.dma_semaphore, #tpu.memory_space<semaphore_mem>>
    %11 = tpu.memref_squeeze %10 : memref<1x!tpu.dma_semaphore, #tpu.memory_space<semaphore_mem>> -> memref<!tpu.dma_semaphore, #tpu.memory_space<semaphore_mem>>
    tpu.enqueue_dma source(%arg6 : memref<1x128xf32, #tpu.memory_space<any>>) target(%arg13 : memref<1x128xf32, #tpu.memory_space<vmem>>) target_semaphore(%11 : memref<!tpu.dma_semaphore, #tpu.memory_space<semaphore_mem>>)
    %c0 = arith.constant 0 : index
    %c0_0 = arith.constant 0 : index
    %12 = vector.load %arg0[%c0, %c0_0] : memref<16x128xf32, #tpu.memory_space<vmem>>, vector<16x128xf32>
    %c0_i32_1 = arith.constant 0 : i32
    %13 = tpu.memref_slice %arg14[%c0_i32_1] : memref<6x!tpu.dma_semaphore, #tpu.memory_space<semaphore_mem>> -> memref<1x!tpu.dma_semaphore, #tpu.memory_space<semaphore_mem>>
    %14 = tpu.memref_squeeze %13 : memref<1x!tpu.dma_semaphore, #tpu.memory_space<semaphore_mem>> -> memref<!tpu.dma_semaphore, #tpu.memory_space<semaphore_mem>>
    tpu.wait_dma2 semaphore(%14 : memref<!tpu.dma_semaphore, #tpu.memory_space<semaphore_mem>>) src(%arg1 : memref<128x128xf32, #tpu.memory_space<any>>) dst(%arg8 : memref<128x128xf32, #tpu.memory_space<vmem>>)
    %c1_i32_2 = arith.constant 1 : i32
    %15 = tpu.memref_slice %arg14[%c1_i32_2] : memref<6x!tpu.dma_semaphore, #tpu.memory_space<semaphore_mem>> -> memref<1x!tpu.dma_semaphore, #tpu.memory_space<semaphore_mem>>
    %16 = tpu.memref_squeeze %15 : memref<1x!tpu.dma_semaphore, #tpu.memory_space<semaphore_mem>> -> memref<!tpu.dma_semaphore, #tpu.memory_space<semaphore_mem>>
    tpu.wait_dma2 semaphore(%16 : memref<!tpu.dma_semaphore, #tpu.memory_space<semaphore_mem>>) src(%arg2 : memref<1x128xf32, #tpu.memory_space<any>>) dst(%arg9 : memref<1x128xf32, #tpu.memory_space<vmem>>)
    %c0_3 = arith.constant 0 : index
    %c0_4 = arith.constant 0 : index
    %17 = vector.load %arg8[%c0_3, %c0_4] : memref<128x128xf32, #tpu.memory_space<vmem>>, vector<128x128xf32>
    %cst = arith.constant dense<0.000000e+00> : vector<16x128xf32>
    %18 = tpu.matmul %12, %17, %cst {dimension_numbers = #tpu.dot_dimension_numbers<[1], [0], [0], [1], [0, 0, 1, 1], [], []>} : vector<16x128xf32>, vector<128x128xf32>, vector<16x128xf32> -> vector<16x128xf32>
    %c0_5 = arith.constant 0 : index
    %c0_6 = arith.constant 0 : index
    %19 = vector.load %arg9[%c0_5, %c0_6] : memref<1x128xf32, #tpu.memory_space<vmem>>, vector<1x128xf32>
    %20 = vector.broadcast %19 : vector<1x128xf32> to vector<16x128xf32>
    %21 = arith.addf %18, %20 : vector<16x128xf32>
    %cst_7 = arith.constant 0.000000e+00 : f32
    %22 = vector.broadcast %cst_7 : f32 to vector<16x128xf32>
    %23 = arith.maximumf %21, %22 : vector<16x128xf32>
    %c2_i32_8 = arith.constant 2 : i32
    %24 = tpu.memref_slice %arg14[%c2_i32_8] : memref<6x!tpu.dma_semaphore, #tpu.memory_space<semaphore_mem>> -> memref<1x!tpu.dma_semaphore, #tpu.memory_space<semaphore_mem>>
    %25 = tpu.memref_squeeze %24 : memref<1x!tpu.dma_semaphore, #tpu.memory_space<semaphore_mem>> -> memref<!tpu.dma_semaphore, #tpu.memory_space<semaphore_mem>>
    tpu.wait_dma2 semaphore(%25 : memref<!tpu.dma_semaphore, #tpu.memory_space<semaphore_mem>>) src(%arg3 : memref<128x128xf32, #tpu.memory_space<any>>) dst(%arg10 : memref<128x128xf32, #tpu.memory_space<vmem>>)
    %c3_i32_9 = arith.constant 3 : i32
    %26 = tpu.memref_slice %arg14[%c3_i32_9] : memref<6x!tpu.dma_semaphore, #tpu.memory_space<semaphore_mem>> -> memref<1x!tpu.dma_semaphore, #tpu.memory_space<semaphore_mem>>
    %27 = tpu.memref_squeeze %26 : memref<1x!tpu.dma_semaphore, #tpu.memory_space<semaphore_mem>> -> memref<!tpu.dma_semaphore, #tpu.memory_space<semaphore_mem>>
    tpu.wait_dma2 semaphore(%27 : memref<!tpu.dma_semaphore, #tpu.memory_space<semaphore_mem>>) src(%arg4 : memref<1x128xf32, #tpu.memory_space<any>>) dst(%arg11 : memref<1x128xf32, #tpu.memory_space<vmem>>)
    %c0_10 = arith.constant 0 : index
    %c0_11 = arith.constant 0 : index
    %28 = vector.load %arg10[%c0_10, %c0_11] : memref<128x128xf32, #tpu.memory_space<vmem>>, vector<128x128xf32>
    %cst_12 = arith.constant dense<0.000000e+00> : vector<16x128xf32>
    %29 = tpu.matmul %23, %28, %cst_12 {dimension_numbers = #tpu.dot_dimension_numbers<[1], [0], [0], [1], [0, 0, 1, 1], [], []>} : vector<16x128xf32>, vector<128x128xf32>, vector<16x128xf32> -> vector<16x128xf32>
    %c0_13 = arith.constant 0 : index
    %c0_14 = arith.constant 0 : index
    %30 = vector.load %arg11[%c0_13, %c0_14] : memref<1x128xf32, #tpu.memory_space<vmem>>, vector<1x128xf32>
    %31 = vector.broadcast %30 : vector<1x128xf32> to vector<16x128xf32>
    %32 = arith.addf %29, %31 : vector<16x128xf32>
    %cst_15 = arith.constant 0.000000e+00 : f32
    %33 = vector.broadcast %cst_15 : f32 to vector<16x128xf32>
    %34 = arith.maximumf %32, %33 : vector<16x128xf32>
    %c4_i32_16 = arith.constant 4 : i32
    %35 = tpu.memref_slice %arg14[%c4_i32_16] : memref<6x!tpu.dma_semaphore, #tpu.memory_space<semaphore_mem>> -> memref<1x!tpu.dma_semaphore, #tpu.memory_space<semaphore_mem>>
    %36 = tpu.memref_squeeze %35 : memref<1x!tpu.dma_semaphore, #tpu.memory_space<semaphore_mem>> -> memref<!tpu.dma_semaphore, #tpu.memory_space<semaphore_mem>>
    tpu.wait_dma2 semaphore(%36 : memref<!tpu.dma_semaphore, #tpu.memory_space<semaphore_mem>>) src(%arg5 : memref<128x128xf32, #tpu.memory_space<any>>) dst(%arg12 : memref<128x128xf32, #tpu.memory_space<vmem>>)
    %c5_i32_17 = arith.constant 5 : i32
    %37 = tpu.memref_slice %arg14[%c5_i32_17] : memref<6x!tpu.dma_semaphore, #tpu.memory_space<semaphore_mem>> -> memref<1x!tpu.dma_semaphore, #tpu.memory_space<semaphore_mem>>
    %38 = tpu.memref_squeeze %37 : memref<1x!tpu.dma_semaphore, #tpu.memory_space<semaphore_mem>> -> memref<!tpu.dma_semaphore, #tpu.memory_space<semaphore_mem>>
    tpu.wait_dma2 semaphore(%38 : memref<!tpu.dma_semaphore, #tpu.memory_space<semaphore_mem>>) src(%arg6 : memref<1x128xf32, #tpu.memory_space<any>>) dst(%arg13 : memref<1x128xf32, #tpu.memory_space<vmem>>)
    %c0_18 = arith.constant 0 : index
    %c0_19 = arith.constant 0 : index
    %39 = vector.load %arg12[%c0_18, %c0_19] : memref<128x128xf32, #tpu.memory_space<vmem>>, vector<128x128xf32>
    %cst_20 = arith.constant dense<0.000000e+00> : vector<16x128xf32>
    %40 = tpu.matmul %34, %39, %cst_20 {dimension_numbers = #tpu.dot_dimension_numbers<[1], [0], [0], [1], [0, 0, 1, 1], [], []>} : vector<16x128xf32>, vector<128x128xf32>, vector<16x128xf32> -> vector<16x128xf32>
    %c0_21 = arith.constant 0 : index
    %c0_22 = arith.constant 0 : index
    %41 = vector.load %arg13[%c0_21, %c0_22] : memref<1x128xf32, #tpu.memory_space<vmem>>, vector<1x128xf32>
    %42 = vector.broadcast %41 : vector<1x128xf32> to vector<16x128xf32>
    %43 = arith.addf %40, %42 : vector<16x128xf32>
    %c0_23 = arith.constant 0 : index
    %c0_24 = arith.constant 0 : index
    %44 = vector.load %arg7[%c0_23, %c0_24] : memref<16x128xf32, #tpu.memory_space<vmem>>, vector<16x128xf32>
    tpu.vector_store %arg7[%c0_23, %c0_24], %43 {strides = array<i32>} : memref<16x128xf32, #tpu.memory_space<vmem>>, vector<16x128xf32>,
    return
  }
}

</mosaic_0001>

<bundles_post_ra>
// kernel: tpu_custom_call.1
= control target key start
LH: loop header
LB: loop body
LE: loop exit
PB: predicated region body
PF: predicated region fallthrough
CT: control target
= control target key end

     0   :  { %12 = vsyncpa [#allocation10], 0  ;;  %s1122_s0 = inlined_call_operand.hbm [shape: f32[16,128], index: 0, kind: input, shape index: {}]   ;;  %s1123_s1 = inlined_call_operand.hbm [shape: f32[128,128], index: 1, kind: input, shape index: {}]   ;;  %s1124_s2 = inlined_call_operand.vmem [shape: f32[1,128], index: 2, kind: input, shape index: {}]   ;;  %s1125_s3 = inlined_call_operand.hbm [shape: f32[128,128], index: 3, kind: input, shape index: {}]   ;;  %s1126_s4 = inlined_call_operand.vmem [shape: f32[1,128], index: 4, kind: input, shape index: {}]   ;;  %s1127_s5 = inlined_call_operand.hbm [shape: f32[128,128], index: 5, kind: input, shape index: {}]   ;;  %s1128_s6 = inlined_call_operand.vmem [shape: f32[1,128], index: 6, kind: input, shape index: {}]   ;;  %s1129_s7 = inlined_call_operand.hbm [shape: f32[16,128], index: 7, kind: output, shape index: {}]  }
   0x1   :  { %13 = vsyncpa [#allocation11], 0  ;;  %s1000_s24 = smov [#allocation9]   ;;  %s874_s28 = scalar_lea.hbm %s1122_s0, 256 }
   0x2   :  { %s19_s25 = sshll.u32 %s1000_s24, 4  ;;  %p875_p0 = scmp.ne.s32.totalorder %s1122_s0, %s874_s28  ;;  %s20_s25 = int_to_ptr.vmem [resolvable:$true] %s19_s25 }
   0x3   :  { %p878_p1 = scmp.lt.u32.totalorder %s874_s28, %s1122_s0 }
   0x5   :  { %p880_p2 = pnand %p878_p1, %p875_p0 }
   0x7   :  { %883 = shalt.err (!%p880_p2)
}
   0x8   :  { %s884_s10 = scalar_lea.vmem %s20_s25, 256  ;;  %p889_p4 = scmp.lt.s32.totalorder %s20_s25, %s20_s25 }
   0x9   :  { %p885_p3 = scmp.ne.s32.totalorder %s20_s25, %s884_s10  ;;  %p890_p5 = scmp.lt.s32.totalorder %s884_s10, %s884_s10 }
   0xb   :  { %p891_p6 = por %p890_p5, %p889_p4 }
   0xd   :  { %p892_p7 = pnand %p891_p6, %p885_p3 }
   0xf   :  { %895 = shalt.err (!%p892_p7)
}
  0x10   :  { %s1001_s11 = smov 128   ;;  %s1002_s12 = smov 8  }
  0x11   :  { %25 = dma.hbm_to_vmem [thread:$0]  %s1122_s0, 256, %s20_s25, [#allocation10], %s1001_s11, %s1001_s11, %s1002_s12  }
  0x12   :  { %984 = dma.done.wait [#allocation10], 256  }
  0x13   :  { %985 = vsyncadd [#allocation10], 4294967040  ;;  %s1003_s15 = smov [#allocation2]   ;;  %s896_s19 = scalar_lea.hbm %s1123_s1, 2048 }
  0x14   :  { %s36_s16 = sshll.u32 %s1003_s15, 4  ;;  %p897_p8 = scmp.ne.s32.totalorder %s1123_s1, %s896_s19  ;;  %s37_s16 = int_to_ptr.vmem [resolvable:$true] %s36_s16 }
  0x15   :  { %p900_p9 = scmp.lt.u32.totalorder %s896_s19, %s1123_s1 }
  0x17   :  { %p902_p10 = pnand %p900_p9, %p897_p8 }
  0x19   :  { %905 = shalt.err (!%p902_p10)  }
  0x1a   :  { %s906_s0 = scalar_lea.vmem %s37_s16, 2048  ;;  %p911_p12 = scmp.lt.s32.totalorder %s37_s16, %s37_s16 }
  0x1b   :  { %p907_p11 = scmp.ne.s32.totalorder %s37_s16, %s906_s0  ;;  %p912_p13 = scmp.lt.s32.totalorder %s906_s0, %s906_s0 }
  0x1d   :  { %p913_p0 = por %p912_p13, %p911_p12 }
  0x1f   :  { %p914_p1 = pnand %p913_p0, %p907_p11 }
  0x21   :  { %917 = shalt.err (!%p914_p1)  }
  0x22   :  { %39 = dma.hbm_to_vmem [thread:$0]  %s1123_s1, 2048, %s37_s16, [#allocation8]  ;;  %v58_v0 = vld [vmem:[%s1124_s2] sm:$0x1] }
  0x23   :  { %59 = vst [vmem:[#allocation3] sm:$0x1] %v58_v0 }
  0x24   :  { %84 = vsyncadd [#allocation8 + $0x1], 16  ;;  %v115_v1 = vld [vmem:[%s1126_s4] sm:$0x1]  ;;  %s1004_s30 = smov [#allocation4]   ;;  %s918_s13 = scalar_lea.hbm %s1125_s3, 2048 }
  0x25   :  { %s93_s8 = sshll.u32 %s1004_s30, 4  ;;  %116 = vst [vmem:[#allocation5] sm:$0x1] %v115_v1  ;;  %p919_p2 = scmp.ne.s32.totalorder %s1125_s3, %s918_s13  ;;  %s94_s8 = int_to_ptr.vmem [resolvable:$true] %s93_s8 }
  0x26   :  { %p922_p3 = scmp.lt.u32.totalorder %s918_s13, %s1125_s3 }
  0x28   :  { %p924_p4 = pnand %p922_p3, %p919_p2 }
  0x2a   :  { %927 = shalt.err (!%p924_p4)  }
  0x2b   :  { %s928_s16 = scalar_lea.vmem %s94_s8, 2048  ;;  %p933_p6 = scmp.lt.s32.totalorder %s94_s8, %s94_s8 }
  0x2c   :  { %p929_p5 = scmp.ne.s32.totalorder %s94_s8, %s928_s16  ;;  %p934_p7 = scmp.lt.s32.totalorder %s928_s16, %s928_s16 }
  0x2e   :  { %p935_p8 = por %p934_p7, %p933_p6 }
  0x30   :  { %p936_p9 = pnand %p935_p8, %p929_p5 }
  0x32   :  { %939 = shalt.err (!%p936_p9)  }
  0x33   :  { %96 = dma.hbm_to_vmem [thread:$0]  %s1125_s3, 2048, %s94_s8, [#allocation8 + $0x2] }
  0x34   :  { %141 = vsyncadd [#allocation8 + $0x3], 16  ;;  %v172_v2 = vld [vmem:[%s1128_s6] sm:$0x1]  ;;  %s1005_s20 = smov [#allocation6]   ;;  %s940_s0 = scalar_lea.hbm %s1127_s5, 2048 }
  0x35   :  { %s150_s21 = sshll.u32 %s1005_s20, 4  ;;  %173 = vst [vmem:[#allocation7] sm:$0x1] %v172_v2  ;;  %p941_p10 = scmp.ne.s32.totalorder %s1127_s5, %s940_s0  ;;  %s151_s21 = int_to_ptr.vmem [resolvable:$true] %s150_s21 }
  0x36   :  { %p944_p11 = scmp.lt.u32.totalorder %s940_s0, %s1127_s5 }
  0x38   :  { %p946_p12 = pnand %p944_p11, %p941_p10 }
  0x3a   :  { %949 = shalt.err (!%p946_p12)  }
  0x3b   :  { %s950_s3 = scalar_lea.vmem %s151_s21, 2048  ;;  %p955_p0 = scmp.lt.s32.totalorder %s151_s21, %s151_s21 }
  0x3c   :  { %p951_p13 = scmp.ne.s32.totalorder %s151_s21, %s950_s3  ;;  %p956_p1 = scmp.lt.s32.totalorder %s950_s3, %s950_s3 }
  0x3e   :  { %p957_p2 = por %p956_p1, %p955_p0 }
  0x40   :  { %p958_p3 = pnand %p957_p2, %p951_p13 }
  0x42   :  { %961 = shalt.err (!%p958_p3)  }
  0x43   :  { %153 = dma.hbm_to_vmem [thread:$0]  %s1127_s5, 2048, %s151_s21, [#allocation8 + $0x4] }
  0x44   :  { %198 = vsyncadd [#allocation8 + $0x5], 16  ;;  %v199_v3 = vld [vmem:[#allocation9] sm:$0xff]  ;;  %v200_v4 = vld [vmem:[#allocation9 + $0x8] sm:$0xff] }
  0x45   :  { %986 = dma.done.wait [#allocation8], 2048 }
  0x46   :  { %987 = vsyncadd [#allocation8], 4294965248 }
  0x47   :  { %988 = dma.done.wait [#allocation8 + $0x1], 16 }
  0x48   :  { %989 = vsyncadd [#allocation8 + $0x1], 4294967280  ;;  %698 = vmatprep.mubr.f32.mxu0 %v199_v3  ;;  %v207_v5 = vld [vmem:[#allocation2] sm:$0xff]  ;;  %v208_v6 = vld [vmem:[#allocation2 + $0x8] sm:$0xff] }
  0x49   :  { %v209_v7 = vld [vmem:[#allocation2 + $0x10] sm:$0xff]  ;;  %v771_v8 = vpack.c.bf16 %v208_v6, %v207_v5  ;;  %v210_v9 = vld [vmem:[#allocation2 + $0x18] sm:$0xff]  ;;  %v211_v11 = vld [vmem:[#allocation2 + $0x20] sm:$0xff] }
  0x4a   :  { %v775_v10 = vpack.c.bf16 %v210_v9, %v209_v7  ;;  %v212_v12 = vld [vmem:[#allocation2 + $0x28] sm:$0xff]  ;;  %v213_v14 = vld [vmem:[#allocation2 + $0x30] sm:$0xff]  ;;  %v214_v15 = vld [vmem:[#allocation2 + $0x38] sm:$0xff] }
  0x4b   :  { %772 = vmatprep.subr.bf16.mxu0 %v771_v8  ;;  %v779_v13 = vpack.c.bf16 %v212_v12, %v211_v11  ;;  %v783_v16 = vpack.c.bf16 %v214_v15, %v213_v14  ;;  %v215_v17 = vld [vmem:[#allocation2 + $0x40] sm:$0xff]  ;;  %v216_v18 = vld [vmem:[#allocation2 + $0x48] sm:$0xff]  ;;  %v217_v20 = vld [vmem:[#allocation2 + $0x50] sm:$0xff] }
  0x4c   :  { %774 = vmatpush3.bf16.msra.mxu0 %v771_v8  ;;  %v787_v19 = vpack.c.bf16 %v216_v18, %v215_v17  ;;  %v218_v21 = vld [vmem:[#allocation2 + $0x58] sm:$0xff]  ;;  %v219_v23 = vld [vmem:[#allocation2 + $0x60] sm:$0xff]  ;;  %v220_v24 = vld [vmem:[#allocation2 + $0x68] sm:$0xff] }
  0x4d   :  { %776 = vmatprep.subr.bf16.mxu0 %v775_v10  ;;  %v791_v22 = vpack.c.bf16 %v218_v21, %v217_v20  ;;  %v795_v25 = vpack.c.bf16 %v220_v24, %v219_v23  ;;  %v221_v26 = vld [vmem:[#allocation2 + $0x70] sm:$0xff]  ;;  %v222_v27 = vld [vmem:[#allocation2 + $0x78] sm:$0xff]  ;;  %v603_v29 = vld [vmem:[#allocation3] ss:$0 sm:$0xff] }
  0x4e   :  { %v799_v28 = vpack.c.bf16 %v222_v27, %v221_v26 }
  0x50   :  { %778 = vmatpush3.bf16.msra.mxu0 %v775_v10 }
  0x51   :  { %780 = vmatprep.subr.bf16.mxu0 %v779_v13 }
  0x54   :  { %782 = vmatpush3.bf16.msra.mxu0 %v779_v13 }
  0x55   :  { %784 = vmatprep.subr.bf16.mxu0 %v783_v16 }
  0x58   :  { %786 = vmatpush3.bf16.msra.mxu0 %v783_v16 }
  0x59   :  { %788 = vmatprep.subr.bf16.mxu0 %v787_v19 }
  0x5c   :  { %790 = vmatpush3.bf16.msra.mxu0 %v787_v19 }
  0x5d   :  { %792 = vmatprep.subr.bf16.mxu0 %v791_v22 }
  0x60   :  { %794 = vmatpush3.bf16.msra.mxu0 %v791_v22 }
  0x61   :  { %796 = vmatprep.subr.bf16.mxu0 %v795_v25 }
  0x64   :  { %798 = vmatpush3.bf16.msra.mxu0 %v795_v25 }
  0x65   :  { %800 = vmatprep.subr.bf16.mxu0 %v799_v28 }
  0x68   :  { %802 = vmatpush3.bf16.msra.mxu0 %v799_v28 }
  0x6b   :  { %699 = vmatmul.mubr.f32.vlgmr.msra.gmra.mrb[0].mxu0 %v200_v4 }
 0x13e   :  { %v700_v30 = vpop.f32.mrb[0].mxu0 }
 0x13f   :  { %v302_v31 = vadd.f32 %v700_v30, %v603_v29  ;;  %v296_v32 = vpop.f32.mrb[1].mxu0 }
 0x140   :  { %v297_v33 = vadd.f32 %v603_v29, %v296_v32 }
 0x141   :  { %v306_v34 = vmax.f32 %v302_v31, 0.0 }
 0x142   :  { %v305_v35 = vmax.f32 %v297_v33, 0.0 }
 0x143   :  { %990 = dma.done.wait [#allocation8 + $0x2], 2048 }
 0x144   :  { %991 = vsyncadd [#allocation8 + $0x2], 4294965248 }
 0x145   :  { %992 = dma.done.wait [#allocation8 + $0x3], 16 }
 0x146   :  { %993 = vsyncadd [#allocation8 + $0x3], 4294967280  ;;  %733 = vmatprep.mubr.f32.mxu1 %v305_v35  ;;  %v311_v36 = vld [vmem:[#allocation4] sm:$0xff]  ;;  %v312_v37 = vld [vmem:[#allocation4 + $0x8] sm:$0xff] }
 0x147   :  { %v313_v38 = vld [vmem:[#allocation4 + $0x10] sm:$0xff]  ;;  %v803_v39 = vpack.c.bf16 %v312_v37, %v311_v36  ;;  %v314_v40 = vld [vmem:[#allocation4 + $0x18] sm:$0xff]  ;;  %v315_v42 = vld [vmem:[#allocation4 + $0x20] sm:$0xff] }
 0x148   :  { %v807_v41 = vpack.c.bf16 %v314_v40, %v313_v38  ;;  %v316_v43 = vld [vmem:[#allocation4 + $0x28] sm:$0xff]  ;;  %v317_v45 = vld [vmem:[#allocation4 + $0x30] sm:$0xff]  ;;  %v318_v46 = vld [vmem:[#allocation4 + $0x38] sm:$0xff] }
 0x149   :  { %804 = vmatprep.subr.bf16.mxu1 %v803_v39  ;;  %v811_v44 = vpack.c.bf16 %v316_v43, %v315_v42  ;;  %v815_v47 = vpack.c.bf16 %v318_v46, %v317_v45  ;;  %v319_v48 = vld [vmem:[#allocation4 + $0x40] sm:$0xff]  ;;  %v320_v49 = vld [vmem:[#allocation4 + $0x48] sm:$0xff]  ;;  %v321_v51 = vld [vmem:[#allocation4 + $0x50] sm:$0xff] }
 0x14a   :  { %806 = vmatpush3.bf16.msra.mxu1 %v803_v39  ;;  %v819_v50 = vpack.c.bf16 %v320_v49, %v319_v48  ;;  %v322_v52 = vld [vmem:[#allocation4 + $0x58] sm:$0xff]  ;;  %v323_v54 = vld [vmem:[#allocation4 + $0x60] sm:$0xff]  ;;  %v324_v55 = vld [vmem:[#allocation4 + $0x68] sm:$0xff] }
 0x14b   :  { %808 = vmatprep.subr.bf16.mxu1 %v807_v41  ;;  %v823_v53 = vpack.c.bf16 %v322_v52, %v321_v51  ;;  %v827_v56 = vpack.c.bf16 %v324_v55, %v323_v54  ;;  %v325_v57 = vld [vmem:[#allocation4 + $0x70] sm:$0xff]  ;;  %v326_v58 = vld [vmem:[#allocation4 + $0x78] sm:$0xff]  ;;  %v604_v60 = vld [vmem:[#allocation5] ss:$0 sm:$0xff] }
 0x14c   :  { %v831_v59 = vpack.c.bf16 %v326_v58, %v325_v57 }
 0x14e   :  { %810 = vmatpush3.bf16.msra.mxu1 %v807_v41 }
 0x14f   :  { %812 = vmatprep.subr.bf16.mxu1 %v811_v44 }
 0x152   :  { %814 = vmatpush3.bf16.msra.mxu1 %v811_v44 }
 0x153   :  { %816 = vmatprep.subr.bf16.mxu1 %v815_v47 }
 0x156   :  { %818 = vmatpush3.bf16.msra.mxu1 %v815_v47 }
 0x157   :  { %820 = vmatprep.subr.bf16.mxu1 %v819_v50 }
 0x15a   :  { %822 = vmatpush3.bf16.msra.mxu1 %v819_v50 }
 0x15b   :  { %824 = vmatprep.subr.bf16.mxu1 %v823_v53 }
 0x15e   :  { %826 = vmatpush3.bf16.msra.mxu1 %v823_v53 }
 0x15f   :  { %828 = vmatprep.subr.bf16.mxu1 %v827_v56 }
 0x162   :  { %830 = vmatpush3.bf16.msra.mxu1 %v827_v56 }
 0x163   :  { %832 = vmatprep.subr.bf16.mxu1 %v831_v59 }
 0x166   :  { %834 = vmatpush3.bf16.msra.mxu1 %v831_v59 }
 0x169   :  { %734 = vmatmul.mubr.f32.vlgmr.msra.gmra.mrb[0].mxu1 %v306_v34 }
 0x23c   :  { %v735_v61 = vpop.f32.mrb[0].mxu1 }
 0x23d   :  { %v406_v62 = vadd.f32 %v735_v61, %v604_v60  ;;  %v400_v63 = vpop.f32.mrb[1].mxu1 }
 0x23e   :  { %v401_v0 = vadd.f32 %v604_v60, %v400_v63 }
 0x23f   :  { %v410_v1 = vmax.f32 %v406_v62, 0.0 }
 0x240   :  { %v409_v2 = vmax.f32 %v401_v0, 0.0 }
 0x241   :  { %994 = dma.done.wait [#allocation8 + $0x4], 2048 }
 0x242   :  { %995 = vsyncadd [#allocation8 + $0x4], 4294965248 }
 0x243   :  { %996 = dma.done.wait [#allocation8 + $0x5], 16 }
 0x244   :  { %997 = vsyncadd [#allocation8 + $0x5], 4294967280  ;;  %768 = vmatprep.mubr.f32.mxu0 %v409_v2  ;;  %v415_v3 = vld [vmem:[#allocation6] sm:$0xff]  ;;  %v416_v4 = vld [vmem:[#allocation6 + $0x8] sm:$0xff]  ;;  %s1006_s5 = smov [#allocation12]  }
 0x245   :  { %v417_v5 = vld [vmem:[#allocation6 + $0x10] sm:$0xff]  ;;  %v835_v6 = vpack.c.bf16 %v416_v4, %v415_v3  ;;  %v418_v7 = vld [vmem:[#allocation6 + $0x18] sm:$0xff]  ;;  %v419_v9 = vld [vmem:[#allocation6 + $0x20] sm:$0xff]  ;;  %s520_s29 = sshll.u32 %s1006_s5, 4  ;;  %s521_s29 = int_to_ptr.vmem [resolvable:$true] %s520_s29 }
 0x246   :  { %v839_v8 = vpack.c.bf16 %v418_v7, %v417_v5  ;;  %v420_v10 = vld [vmem:[#allocation6 + $0x28] sm:$0xff]  ;;  %v421_v12 = vld [vmem:[#allocation6 + $0x30] sm:$0xff]  ;;  %v422_v13 = vld [vmem:[#allocation6 + $0x38] sm:$0xff]  ;;  %s962_s30 = scalar_lea.vmem %s521_s29, 256  ;;  %p967_p5 = scmp.lt.s32.totalorder %s521_s29, %s521_s29 }
 0x247   :  { %836 = vmatprep.subr.bf16.mxu0 %v835_v6  ;;  %v843_v11 = vpack.c.bf16 %v420_v10, %v419_v9  ;;  %v847_v14 = vpack.c.bf16 %v422_v13, %v421_v12  ;;  %v423_v15 = vld [vmem:[#allocation6 + $0x40] sm:$0xff]  ;;  %v424_v16 = vld [vmem:[#allocation6 + $0x48] sm:$0xff]  ;;  %v425_v18 = vld [vmem:[#allocation6 + $0x50] sm:$0xff]  ;;  %p963_p4 = scmp.ne.s32.totalorder %s521_s29, %s962_s30  ;;  %p968_p6 = scmp.lt.s32.totalorder %s962_s30, %s962_s30 }
 0x248   :  { %838 = vmatpush3.bf16.msra.mxu0 %v835_v6  ;;  %v851_v17 = vpack.c.bf16 %v424_v16, %v423_v15  ;;  %v426_v19 = vld [vmem:[#allocation6 + $0x58] sm:$0xff]  ;;  %v427_v21 = vld [vmem:[#allocation6 + $0x60] sm:$0xff]  ;;  %v428_v22 = vld [vmem:[#allocation6 + $0x68] sm:$0xff] }
 0x249   :  { %840 = vmatprep.subr.bf16.mxu0 %v839_v8  ;;  %v855_v20 = vpack.c.bf16 %v426_v19, %v425_v18  ;;  %v859_v23 = vpack.c.bf16 %v428_v22, %v427_v21  ;;  %v429_v24 = vld [vmem:[#allocation6 + $0x70] sm:$0xff]  ;;  %v430_v25 = vld [vmem:[#allocation6 + $0x78] sm:$0xff]  ;;  %v605_v27 = vld [vmem:[#allocation7] ss:$0 sm:$0xff]  ;;  %p969_p7 = por %p968_p6, %p967_p5 }
 0x24a   :  { %v863_v26 = vpack.c.bf16 %v430_v25, %v429_v24 }
 0x24b   :  { %p970_p8 = pnand %p969_p7, %p963_p4 }
 0x24c   :  { %842 = vmatpush3.bf16.msra.mxu0 %v839_v8 }
 0x24d   :  { %844 = vmatprep.subr.bf16.mxu0 %v843_v11 }
 0x250   :  { %846 = vmatpush3.bf16.msra.mxu0 %v843_v11 }
 0x251   :  { %848 = vmatprep.subr.bf16.mxu0 %v847_v14 }
 0x254   :  { %850 = vmatpush3.bf16.msra.mxu0 %v847_v14 }
 0x255   :  { %852 = vmatprep.subr.bf16.mxu0 %v851_v17 }
 0x258   :  { %854 = vmatpush3.bf16.msra.mxu0 %v851_v17 }
 0x259   :  { %856 = vmatprep.subr.bf16.mxu0 %v855_v20 }
 0x25c   :  { %858 = vmatpush3.bf16.msra.mxu0 %v855_v20 }
 0x25d   :  { %860 = vmatprep.subr.bf16.mxu0 %v859_v23 }
 0x260   :  { %862 = vmatpush3.bf16.msra.mxu0 %v859_v23 }
 0x261   :  { %864 = vmatprep.subr.bf16.mxu0 %v863_v26 }
 0x264   :  { %866 = vmatpush3.bf16.msra.mxu0 %v863_v26 }
 0x267   :  { %769 = vmatmul.mubr.f32.vlgmr.msra.gmra.mrb[2].mxu0 %v410_v1 }
 0x33a   :  { %v770_v28 = vpop.f32.mrb[2].mxu0 }
 0x33b   :  { %v510_v29 = vadd.f32 %v770_v28, %v605_v27  ;;  %v504_v30 = vpop.f32.mrb[3].mxu0 }
 0x33c   :  { %v505_v31 = vadd.f32 %v605_v27, %v504_v30 }
 0x33d   :  { %514 = vst [vmem:[#allocation12 + $0x8] sm:$0xff] %v510_v29 }
 0x33e   :  { %513 = vst [vmem:[#allocation12] sm:$0xff] %v505_v31 }
 0x33f   :  { %973 = shalt.err (!%p970_p8)
}
 0x340   :  { %s974_s10 = scalar_lea.hbm %s1129_s7, 256 }
 0x341   :  { %p975_p9 = scmp.ne.s32.totalorder %s1129_s7, %s974_s10  ;;  %p978_p10 = scmp.lt.u32.totalorder %s974_s10, %s1129_s7 }
 0x343   :  { %p980_p11 = pnand %p978_p10, %p975_p9 }
 0x345   :  { %983 = shalt.err (!%p980_p11)
}
 0x346   :  { %526 = dma.vmem_to_hbm [thread:$0]  %s521_s29, 256, %s1129_s7, [#allocation11], %s1001_s11, %s1001_s11, %s1002_s12  }
 0x347   :  { %998 = dma.done.wait [#allocation11], 256  }
 0x348   :  { %999 = vsyncadd [#allocation11], 4294967040 }
 0x349   :  { %530 = vsyncpa [#allocation10], 1 }
 0x34a   :  { %531 = vsyncpa [#allocation11], 1 }
 0x34b   :  { %532 = vsyncmov [#allocation8] }
 0x34e   :  { %s533_s4 = vpop.sfrf %532 }
 0x34f   :  { %p606_p12 = scmp.ne.s32.totalorder %s533_s4, 0 }
 0x351   :  { %537 = shalt.err (%p606_p12)  }
 0x352   :  { %539 = vsyncmov [#allocation8 + $0x1] }
 0x355   :  { %s540_s17 = vpop.sfrf %539 }
 0x356   :  { %p607_p13 = scmp.ne.s32.totalorder %s540_s17, 0 }
 0x358   :  { %544 = shalt.err (%p607_p13)  }
 0x359   :  { %546 = vsyncmov [#allocation8 + $0x2] }
 0x35c   :  { %s547_s18 = vpop.sfrf %546 }
 0x35d   :  { %p608_p0 = scmp.ne.s32.totalorder %s547_s18, 0 }
 0x35f   :  { %551 = shalt.err (%p608_p0)  }
 0x360   :  { %553 = vsyncmov [#allocation8 + $0x3] }
 0x363   :  { %s554_s19 = vpop.sfrf %553 }
 0x364   :  { %p609_p1 = scmp.ne.s32.totalorder %s554_s19, 0 }
 0x366   :  { %558 = shalt.err (%p609_p1)  }
 0x367   :  { %560 = vsyncmov [#allocation8 + $0x4] }
 0x36a   :  { %s561_s7 = vpop.sfrf %560 }
 0x36b   :  { %p610_p2 = scmp.ne.s32.totalorder %s561_s7, 0 }
 0x36d   :  { %565 = shalt.err (%p610_p2)  }
 0x36e   :  { %567 = vsyncmov [#allocation8 + $0x5] }
 0x371   :  { %s568_s11 = vpop.sfrf %567 }
 0x372   :  { %p611_p3 = scmp.ne.s32.totalorder %s568_s11, 0 }
 0x374   :  { %572 = shalt.err (%p611_p3)  }

</bundles_post_ra>
